<compile_context>
chip_gen: v7x
topology: tpu7x:2x2x1
jax: 0.10.0
libtpu: 0.0.40
codegen_flags: <defaults>
</compile_context>

<pallas_src>
import functools

import jax
import jax.numpy as jnp
from jax import lax
from jax.experimental import pallas as pl
from jax.experimental.pallas import tpu as pltpu

NEG_SLOPE = 0.01  # nn.LeakyReLU default used by the nnU-Net props.


def _round_up(x, m):
    return ((x + m - 1) // m) * m


def _repvgg_kernel(x_ref, w_ref, b_ref, o_ref, *, kh, kw, wp, hout, l_acc):
    """One batch image per grid step.

    x_ref: (1, Cin, Lin)       flattened, spatially padded image (row stride wp)
    w_ref: (kh, kw, Cout, Cin) conv weight, tap-major
    b_ref: (Cout, 1)           f32 bias
    o_ref: (1, Cout, hout*wp)  row-padded flat output
    """
    cout = w_ref.shape[2]

    # f32 accumulator initialised with the broadcast bias (saves a full-tile add).
    acc = jnp.broadcast_to(b_ref[...].astype(jnp.float32), (cout, l_acc))

    # Static unrolled loop over the kh*kw taps: each tap is a lane-offset slice
    # of the flat input followed by one MXU matmul with f32 accumulation.
    for dy in range(kh):
        for dx in range(kw):
            t = dy * wp + dx
            shifted = x_ref[0, :, t:t + l_acc]            # (Cin, l_acc)
            acc = acc + jnp.dot(w_ref[dy, dx], shifted,
                                preferred_element_type=jnp.float32)

    acc = jnp.where(acc >= 0, acc, NEG_SLOPE * acc)        # LeakyReLU(0.01)
    o_ref[0] = acc[:, :hout * wp].astype(o_ref.dtype)      # lane-dense store


def repvgg_layer_inference(x_nchw, weight_oihw, bias, *, stride=1,
                           compute_dtype=jnp.bfloat16):
    """Forward pass of RepVGGLayerInference.

    x_nchw      : (N, Cin, H, W)
    weight_oihw : (Cout, Cin, kh, kw)  (PyTorch conv weight layout)
    bias        : (Cout,)
    """
    if stride not in (None, 1):
        # TODO(synk): strided conv variant (module's optional `stride` arg) is
        # not wired into the Pallas kernel; default path (stride=1) implemented.
        raise NotImplementedError("only stride=1 is implemented")

    N, Cin, H, W = x_nchw.shape
    Cout, Cin_w, kh, kw = weight_oihw.shape
    assert Cin == Cin_w
    ph, pw = (kh - 1) // 2, (kw - 1) // 2

    Hp, Wp = H + 2 * ph, W + 2 * pw
    Hout, Wout = Hp - kh + 1, Wp - kw + 1          # == H, W for odd kernels

    l_acc = _round_up(Hout * Wp, 128)              # accumulator / tap-slice width
    t_max = (kh - 1) * Wp + (kw - 1)               # largest tap offset
    l_in = _round_up(t_max + l_acc, 128)           # flat (padded) input width

    cdt = jnp.dtype(compute_dtype) if compute_dtype is not None else jnp.dtype(x_nchw.dtype)
    out_dtype = x_nchw.dtype
    out_itm = jnp.dtype(out_dtype).itemsize

    # Spatial zero-pad, flatten rows (free reshape), zero-pad the flat tail so
    # every tap slice [t, t + l_acc) stays in range.  No activation transposes.
    x_pad = jnp.pad(x_nchw, ((0, 0), (0, 0), (ph, ph), (pw, pw)))
    x_flat = x_pad.reshape(N, Cin, Hp * Wp)
    x_flat = jnp.pad(x_flat, ((0, 0), (0, 0), (0, l_in - Hp * Wp))).astype(cdt)

    # (Cout, Cin, kh, kw) -> (kh, kw, Cout, Cin): tap-major, tiny tensor.
    w_taps = jnp.transpose(weight_oihw, (2, 3, 0, 1)).astype(cdt)
    b2d = bias.reshape(Cout, 1).astype(jnp.float32)

    kernel = functools.partial(_repvgg_kernel, kh=kh, kw=kw, wp=Wp,
                               hout=Hout, l_acc=l_acc)

    itm = cdt.itemsize
    cost = pl.CostEstimate(
        flops=2 * N * Hout * Wout * Cin * Cout * kh * kw,
        transcendentals=0,
        bytes_accessed=(N * Cin * l_in * itm + kh * kw * Cout * Cin * itm
                        + Cout * 4 + N * Cout * Hout * Wp * out_itm),
    )

    # Double-buffered per-step blocks + weights + accumulator, with headroom.
    block_bytes = (2 * Cin * l_in * itm
                   + 2 * Cout * Hout * Wp * out_itm
                   + kh * kw * Cout * Cin * itm + Cout * 4
                   + Cout * l_acc * 4)
    vmem_limit = int(min(64 * 1024 * 1024, max(32 * 1024 * 1024, 4 * block_bytes)))

    out_flat = pl.pallas_call(
        kernel,
        out_shape=jax.ShapeDtypeStruct((N, Cout, Hout * Wp), out_dtype),
        grid_spec=pltpu.PrefetchScalarGridSpec(
            num_scalar_prefetch=0,
            grid=(N,),
            in_specs=[
                pl.BlockSpec((1, Cin, l_in), lambda n: (n, 0, 0)),
                pl.BlockSpec((kh, kw, Cout, Cin), lambda n: (0, 0, 0, 0)),
                pl.BlockSpec((Cout, 1), lambda n: (0, 0)),
            ],
            out_specs=pl.BlockSpec((1, Cout, Hout * Wp), lambda n: (n, 0, 0)),
        ),
        compiler_params=pltpu.CompilerParams(
            dimension_semantics=("parallel",),
            vmem_limit_bytes=vmem_limit,
        ),
        cost_estimate=cost,
    )(x_flat, w_taps, b2d)

    # Row-padded flat -> NCHW: free reshape + one contiguous slice dropping the
    # kw-1 padding columns per row.
    return out_flat.reshape(N, Cout, Hout, Wp)[:, :, :, :Wout]


if __name__ == "__main__":
    # Small deterministic config consistent with the module's __init__:
    # in_planes=4, out_planes=8, kernel_size=(3, 3), stride=None (-> 1).
    N, Cin, H, W = 2, 4, 16, 16
    Cout, kh, kw = 8, 3, 3

    key = jax.random.PRNGKey(0)
    kx, kw_key, kb = jax.random.split(key, 3)
    x = jax.random.normal(kx, (N, Cin, H, W), dtype=jnp.float32)
    weight = 0.1 * jax.random.normal(kw_key, (Cout, Cin, kh, kw), dtype=jnp.float32)
    bias = 0.1 * jax.random.normal(kb, (Cout,), dtype=jnp.float32)

    out = repvgg_layer_inference(x, weight, bias, stride=1,
                                 compute_dtype=jnp.bfloat16)
    out = jax.block_until_ready(out)

    # Reference: plain-XLA conv + LeakyReLU on the same bf16-rounded operands
    # (the kernel feeds the MXU bf16 operands with f32 accumulation, so the
    # per-product values are bit-exact against an f32 conv of rounded inputs).
    xr = x.astype(jnp.bfloat16).astype(jnp.float32)
    wr = weight.astype(jnp.bfloat16).astype(jnp.float32)
    ref = lax.conv_general_dilated(
        xr, wr, window_strides=(1, 1), padding=((1, 1), (1, 1)),
        dimension_numbers=("NCHW", "OIHW", "NCHW"),
    ) + bias.reshape(1, Cout, 1, 1)
    ref = jnp.where(ref >= 0, ref, NEG_SLOPE * ref)

    assert out.shape == (N, Cout, H, W), out.shape
    err = float(jnp.max(jnp.abs(out - ref)))
    assert err < 1e-3, err

    print("KERNEL_OK")
</pallas_src>

<mosaic_0001>
module attributes {stable_mosaic.version = 11 : i64} {
  func.func @_repvgg_kernel(%arg0: i32, %arg1: memref<1x4x512xbf16, #tpu.memory_space<vmem>>, %arg2: memref<3x3x8x4xbf16, #tpu.memory_space<vmem>>, %arg3: memref<8x1xf32, #tpu.memory_space<vmem>>, %arg4: memref<1x8x288xf32, #tpu.memory_space<vmem>>) attributes {dimension_semantics = [#tpu.dimension_semantics<parallel>], iteration_bounds = array<i64: 2>, scalar_prefetch = 0 : i64, scratch_operands = 0 : i64, tpu.core_type = #tpu.core_type<tc>, window_params = [{transform_indices = @transform_0, window_bounds = array<i64: 1, 4, 512>}, {pipeline_mode = #tpu.pipeline_mode<synchronous>, transform_indices = @transform_1, window_bounds = array<i64: 3, 3, 8, 4>}, {pipeline_mode = #tpu.pipeline_mode<synchronous>, transform_indices = @transform_2, window_bounds = array<i64: 8, 1>}, {transform_indices = @transform_3, window_bounds = array<i64: 1, 8, 288>}]} {
    %c0 = arith.constant 0 : index
    %c0_0 = arith.constant 0 : index
    %0 = vector.load %arg3[%c0, %c0_0] : memref<8x1xf32, #tpu.memory_space<vmem>>, vector<8x1xf32>
    %1 = vector.shape_cast %0 : vector<8x1xf32> to vector<8x1xf32>
    %2 = vector.broadcast %1 : vector<8x1xf32> to vector<8x384xf32>
    %c0_1 = arith.constant 0 : index
    %c0_2 = arith.constant 0 : index
    %c0_3 = arith.constant 0 : index
    %3 = vector.load %arg1[%c0_1, %c0_2, %c0_3] : memref<1x4x512xbf16, #tpu.memory_space<vmem>>, vector<1x4x384xbf16>
    %4 = vector.shape_cast %3 : vector<1x4x384xbf16> to vector<4x384xbf16>
    %c0_4 = arith.constant 0 : index
    %c0_5 = arith.constant 0 : index
    %c0_6 = arith.constant 0 : index
    %c0_7 = arith.constant 0 : index
    %5 = vector.load %arg2[%c0_4, %c0_5, %c0_6, %c0_7] : memref<3x3x8x4xbf16, #tpu.memory_space<vmem>>, vector<1x1x8x4xbf16>
    %6 = vector.shape_cast %5 : vector<1x1x8x4xbf16> to vector<8x4xbf16>
    %cst = arith.constant dense<0.000000e+00> : vector<8x384xf32>
    %7 = tpu.matmul %6, %4, %cst {dimension_numbers = #tpu.dot_dimension_numbers<[1], [0], [0], [1], [0, 0, 1, 1], [], []>} : vector<8x4xbf16>, vector<4x384xbf16>, vector<8x384xf32> -> vector<8x384xf32>
    %8 = arith.addf %2, %7 : vector<8x384xf32>
    %c0_8 = arith.constant 0 : index
    %c0_9 = arith.constant 0 : index
    %c1 = arith.constant 1 : index
    %9 = vector.load %arg1[%c0_8, %c0_9, %c1] : memref<1x4x512xbf16, #tpu.memory_space<vmem>>, vector<1x4x384xbf16>
    %10 = vector.shape_cast %9 : vector<1x4x384xbf16> to vector<4x384xbf16>
    %c0_10 = arith.constant 0 : index
    %c1_11 = arith.constant 1 : index
    %c0_12 = arith.constant 0 : index
    %c0_13 = arith.constant 0 : index
    %11 = vector.load %arg2[%c0_10, %c1_11, %c0_12, %c0_13] : memref<3x3x8x4xbf16, #tpu.memory_space<vmem>>, vector<1x1x8x4xbf16>
    %12 = vector.shape_cast %11 : vector<1x1x8x4xbf16> to vector<8x4xbf16>
    %cst_14 = arith.constant dense<0.000000e+00> : vector<8x384xf32>
    %13 = tpu.matmul %12, %10, %cst_14 {dimension_numbers = #tpu.dot_dimension_numbers<[1], [0], [0], [1], [0, 0, 1, 1], [], []>} : vector<8x4xbf16>, vector<4x384xbf16>, vector<8x384xf32> -> vector<8x384xf32>
    %14 = arith.addf %8, %13 : vector<8x384xf32>
    %c0_15 = arith.constant 0 : index
    %c0_16 = arith.constant 0 : index
    %c2 = arith.constant 2 : index
    %15 = vector.load %arg1[%c0_15, %c0_16, %c2] : memref<1x4x512xbf16, #tpu.memory_space<vmem>>, vector<1x4x384xbf16>
    %16 = vector.shape_cast %15 : vector<1x4x384xbf16> to vector<4x384xbf16>
    %c0_17 = arith.constant 0 : index
    %c2_18 = arith.constant 2 : index
    %c0_19 = arith.constant 0 : index
    %c0_20 = arith.constant 0 : index
    %17 = vector.load %arg2[%c0_17, %c2_18, %c0_19, %c0_20] : memref<3x3x8x4xbf16, #tpu.memory_space<vmem>>, vector<1x1x8x4xbf16>
    %18 = vector.shape_cast %17 : vector<1x1x8x4xbf16> to vector<8x4xbf16>
    %cst_21 = arith.constant dense<0.000000e+00> : vector<8x384xf32>
    %19 = tpu.matmul %18, %16, %cst_21 {dimension_numbers = #tpu.dot_dimension_numbers<[1], [0], [0], [1], [0, 0, 1, 1], [], []>} : vector<8x4xbf16>, vector<4x384xbf16>, vector<8x384xf32> -> vector<8x384xf32>
    %20 = arith.addf %14, %19 : vector<8x384xf32>
    %c0_22 = arith.constant 0 : index
    %c0_23 = arith.constant 0 : index
    %c18 = arith.constant 18 : index
    %21 = vector.load %arg1[%c0_22, %c0_23, %c18] : memref<1x4x512xbf16, #tpu.memory_space<vmem>>, vector<1x4x384xbf16>
    %22 = vector.shape_cast %21 : vector<1x4x384xbf16> to vector<4x384xbf16>
    %c1_24 = arith.constant 1 : index
    %c0_25 = arith.constant 0 : index
    %c0_26 = arith.constant 0 : index
    %c0_27 = arith.constant 0 : index
    %23 = vector.load %arg2[%c1_24, %c0_25, %c0_26, %c0_27] : memref<3x3x8x4xbf16, #tpu.memory_space<vmem>>, vector<1x1x8x4xbf16>
    %24 = vector.shape_cast %23 : vector<1x1x8x4xbf16> to vector<8x4xbf16>
    %cst_28 = arith.constant dense<0.000000e+00> : vector<8x384xf32>
    %25 = tpu.matmul %24, %22, %cst_28 {dimension_numbers = #tpu.dot_dimension_numbers<[1], [0], [0], [1], [0, 0, 1, 1], [], []>} : vector<8x4xbf16>, vector<4x384xbf16>, vector<8x384xf32> -> vector<8x384xf32>
    %26 = arith.addf %20, %25 : vector<8x384xf32>
    %c0_29 = arith.constant 0 : index
    %c0_30 = arith.constant 0 : index
    %c19 = arith.constant 19 : index
    %27 = vector.load %arg1[%c0_29, %c0_30, %c19] : memref<1x4x512xbf16, #tpu.memory_space<vmem>>, vector<1x4x384xbf16>
    %28 = vector.shape_cast %27 : vector<1x4x384xbf16> to vector<4x384xbf16>
    %c1_31 = arith.constant 1 : index
    %c1_32 = arith.constant 1 : index
    %c0_33 = arith.constant 0 : index
    %c0_34 = arith.constant 0 : index
    %29 = vector.load %arg2[%c1_31, %c1_32, %c0_33, %c0_34] : memref<3x3x8x4xbf16, #tpu.memory_space<vmem>>, vector<1x1x8x4xbf16>
    %30 = vector.shape_cast %29 : vector<1x1x8x4xbf16> to vector<8x4xbf16>
    %cst_35 = arith.constant dense<0.000000e+00> : vector<8x384xf32>
    %31 = tpu.matmul %30, %28, %cst_35 {dimension_numbers = #tpu.dot_dimension_numbers<[1], [0], [0], [1], [0, 0, 1, 1], [], []>} : vector<8x4xbf16>, vector<4x384xbf16>, vector<8x384xf32> -> vector<8x384xf32>
    %32 = arith.addf %26, %31 : vector<8x384xf32>
    %c0_36 = arith.constant 0 : index
    %c0_37 = arith.constant 0 : index
    %c20 = arith.constant 20 : index
    %33 = vector.load %arg1[%c0_36, %c0_37, %c20] : memref<1x4x512xbf16, #tpu.memory_space<vmem>>, vector<1x4x384xbf16>
    %34 = vector.shape_cast %33 : vector<1x4x384xbf16> to vector<4x384xbf16>
    %c1_38 = arith.constant 1 : index
    %c2_39 = arith.constant 2 : index
    %c0_40 = arith.constant 0 : index
    %c0_41 = arith.constant 0 : index
    %35 = vector.load %arg2[%c1_38, %c2_39, %c0_40, %c0_41] : memref<3x3x8x4xbf16, #tpu.memory_space<vmem>>, vector<1x1x8x4xbf16>
    %36 = vector.shape_cast %35 : vector<1x1x8x4xbf16> to vector<8x4xbf16>
    %cst_42 = arith.constant dense<0.000000e+00> : vector<8x384xf32>
    %37 = tpu.matmul %36, %34, %cst_42 {dimension_numbers = #tpu.dot_dimension_numbers<[1], [0], [0], [1], [0, 0, 1, 1], [], []>} : vector<8x4xbf16>, vector<4x384xbf16>, vector<8x384xf32> -> vector<8x384xf32>
    %38 = arith.addf %32, %37 : vector<8x384xf32>
    %c0_43 = arith.constant 0 : index
    %c0_44 = arith.constant 0 : index
    %c36 = arith.constant 36 : index
    %39 = vector.load %arg1[%c0_43, %c0_44, %c36] : memref<1x4x512xbf16, #tpu.memory_space<vmem>>, vector<1x4x384xbf16>
    %40 = vector.shape_cast %39 : vector<1x4x384xbf16> to vector<4x384xbf16>
    %c2_45 = arith.constant 2 : index
    %c0_46 = arith.constant 0 : index
    %c0_47 = arith.constant 0 : index
    %c0_48 = arith.constant 0 : index
    %41 = vector.load %arg2[%c2_45, %c0_46, %c0_47, %c0_48] : memref<3x3x8x4xbf16, #tpu.memory_space<vmem>>, vector<1x1x8x4xbf16>
    %42 = vector.shape_cast %41 : vector<1x1x8x4xbf16> to vector<8x4xbf16>
    %cst_49 = arith.constant dense<0.000000e+00> : vector<8x384xf32>
    %43 = tpu.matmul %42, %40, %cst_49 {dimension_numbers = #tpu.dot_dimension_numbers<[1], [0], [0], [1], [0, 0, 1, 1], [], []>} : vector<8x4xbf16>, vector<4x384xbf16>, vector<8x384xf32> -> vector<8x384xf32>
    %44 = arith.addf %38, %43 : vector<8x384xf32>
    %c0_50 = arith.constant 0 : index
    %c0_51 = arith.constant 0 : index
    %c37 = arith.constant 37 : index
    %45 = vector.load %arg1[%c0_50, %c0_51, %c37] : memref<1x4x512xbf16, #tpu.memory_space<vmem>>, vector<1x4x384xbf16>
    %46 = vector.shape_cast %45 : vector<1x4x384xbf16> to vector<4x384xbf16>
    %c2_52 = arith.constant 2 : index
    %c1_53 = arith.constant 1 : index
    %c0_54 = arith.constant 0 : index
    %c0_55 = arith.constant 0 : index
    %47 = vector.load %arg2[%c2_52, %c1_53, %c0_54, %c0_55] : memref<3x3x8x4xbf16, #tpu.memory_space<vmem>>, vector<1x1x8x4xbf16>
    %48 = vector.shape_cast %47 : vector<1x1x8x4xbf16> to vector<8x4xbf16>
    %cst_56 = arith.constant dense<0.000000e+00> : vector<8x384xf32>
    %49 = tpu.matmul %48, %46, %cst_56 {dimension_numbers = #tpu.dot_dimension_numbers<[1], [0], [0], [1], [0, 0, 1, 1], [], []>} : vector<8x4xbf16>, vector<4x384xbf16>, vector<8x384xf32> -> vector<8x384xf32>
    %50 = arith.addf %44, %49 : vector<8x384xf32>
    %c0_57 = arith.constant 0 : index
    %c0_58 = arith.constant 0 : index
    %c38 = arith.constant 38 : index
    %51 = vector.load %arg1[%c0_57, %c0_58, %c38] : memref<1x4x512xbf16, #tpu.memory_space<vmem>>, vector<1x4x384xbf16>
    %52 = vector.shape_cast %51 : vector<1x4x384xbf16> to vector<4x384xbf16>
    %c2_59 = arith.constant 2 : index
    %c2_60 = arith.constant 2 : index
    %c0_61 = arith.constant 0 : index
    %c0_62 = arith.constant 0 : index
    %53 = vector.load %arg2[%c2_59, %c2_60, %c0_61, %c0_62] : memref<3x3x8x4xbf16, #tpu.memory_space<vmem>>, vector<1x1x8x4xbf16>
    %54 = vector.shape_cast %53 : vector<1x1x8x4xbf16> to vector<8x4xbf16>
    %cst_63 = arith.constant dense<0.000000e+00> : vector<8x384xf32>
    %55 = tpu.matmul %54, %52, %cst_63 {dimension_numbers = #tpu.dot_dimension_numbers<[1], [0], [0], [1], [0, 0, 1, 1], [], []>} : vector<8x4xbf16>, vector<4x384xbf16>, vector<8x384xf32> -> vector<8x384xf32>
    %56 = arith.addf %50, %55 : vector<8x384xf32>
    %cst_64 = arith.constant 0.000000e+00 : f32
    %57 = vector.broadcast %cst_64 : f32 to vector<8x384xf32>
    %58 = arith.cmpf oge, %56, %57 : vector<8x384xf32>
    %cst_65 = arith.constant 0.00999999977 : f32
    %59 = vector.broadcast %cst_65 : f32 to vector<8x384xf32>
    %60 = arith.mulf %59, %56 : vector<8x384xf32>
    %61 = arith.select %58, %56, %60 : vector<8x384xi1>, vector<8x384xf32>
    %62 = vector.extract_strided_slice %61 {offsets = [0, 0], sizes = [8, 288], strides = [1, 1]} : vector<8x384xf32> to vector<8x288xf32>
    %c0_66 = arith.constant 0 : index
    %c0_67 = arith.constant 0 : index
    %c0_68 = arith.constant 0 : index
    %63 = vector.load %arg4[%c0_66, %c0_67, %c0_68] : memref<1x8x288xf32, #tpu.memory_space<vmem>>, vector<1x8x288xf32>
    %64 = vector.shape_cast %63 : vector<1x8x288xf32> to vector<8x288xf32>
    %65 = vector.shape_cast %62 : vector<8x288xf32> to vector<1x8x288xf32>
    tpu.vector_store %arg4[%c0_66, %c0_67, %c0_68], %65 {strides = array<i32>} : memref<1x8x288xf32, #tpu.memory_space<vmem>>, vector<1x8x288xf32>,
    return
  }
  func.func @transform_0(%arg0: i32) -> (i32, i32, i32) {
    %c0_i32 = arith.constant 0 : i32
    %c0_i32_0 = arith.constant 0 : i32
    %c0_i32_1 = arith.constant 0 : i32
    return %arg0, %c0_i32, %c0_i32_0 : i32, i32, i32
  }
  func.func @transform_1(%arg0: i32) -> (i32, i32, i32, i32) {
    %c0_i32 = arith.constant 0 : i32
    %c0_i32_0 = arith.constant 0 : i32
    %c0_i32_1 = arith.constant 0 : i32
    %c0_i32_2 = arith.constant 0 : i32
    %c0_i32_3 = arith.constant 0 : i32
    return %c0_i32, %c0_i32_0, %c0_i32_1, %c0_i32_2 : i32, i32, i32, i32
  }
  func.func @transform_2(%arg0: i32) -> (i32, i32) {
    %c0_i32 = arith.constant 0 : i32
    %c0_i32_0 = arith.constant 0 : i32
    %c0_i32_1 = arith.constant 0 : i32
    return %c0_i32, %c0_i32_0 : i32, i32
  }
  func.func @transform_3(%arg0: i32) -> (i32, i32, i32) {
    %c0_i32 = arith.constant 0 : i32
    %c0_i32_0 = arith.constant 0 : i32
    %c0_i32_1 = arith.constant 0 : i32
    return %arg0, %c0_i32, %c0_i32_0 : i32, i32, i32
  }
}

</mosaic_0001>

<bundles_post_ra>
// kernel: tpu_custom_call.1
= control target key start
LH: loop header
LB: loop body
LE: loop exit
PB: predicated region body
PF: predicated region fallthrough
CT: control target
= control target key end

     0   :  { %8 = vsyncpa [#allocation3], 0  ;;  %s1977_s0 = inlined_call_operand.vmem [shape: bf16[2,4,512], index: 0, kind: input, shape index: {}]   ;;  %s1978_s1 = inlined_call_operand.vmem [shape: bf16[3,3,8,4], index: 1, kind: input, shape index: {}]   ;;  %s1979_s2 = inlined_call_operand.vmem [shape: f32[8,1], index: 2, kind: input, shape index: {}]   ;;  %s1980_s3 = inlined_call_operand.hbm [shape: f32[2,8,288], index: 3, kind: output, shape index: {}]  }
   0x1   :  { %10 = vsyncpa [#allocation3 + $0x1], 0  ;;  %s1749_s12 = smov 0   ;;  %s1751_s13 = smov 0  }
   0x2   :  { %s1753_s14 = smov 0   ;;  %s1755_s15 = smov 0  }
   0x3 LB: > { %s1770_s16 = sadd.s32 4294967295, %s1714_s15   ;;  %s1412_s17 = sadd.s32 4294967294, %s1714_s15   ;;  %s1714_s15 = sphi %s1755_s15, %s1986_s15   ;;  %s1710_s14 = sphi %s1753_s14, %s1985_s14   ;;  %s1706_s13 = sphi %s1751_s13, %s1984_s13   ;;  %s1702_s12 = sphi %s1749_s12, %s1983_s12  }
   0x4   : > { %s1774_s18 = sadd.s32 1, %s1714_s15   ;;  %s91_s19 = sadd.s32 1, %s1710_s14 }
   0x5   : > { %s88_s20 = ssub.s32 %s1714_s15, %s1774_s18  ;;  %p101_p0 = scmp.ne.s32.totalorder %s1710_s14, %s1706_s13 }
   0x6   : > { %p89_p1 = scmp.eq.s32.totalorder %s88_s20, 0  ;;  %p102_p2 = scmp.eq.s32.totalorder %s1770_s16, 1 }
   0x7   : > { %p107_p3 = scmp.ne.s32.totalorder %s1706_s13, %s1702_s12  ;;  %p108_p4 = scmp.eq.s32.totalorder %s1412_s17, 1 }
   0x8   : > { %s1785_s21 = scalar_select %p89_p1, %s1710_s14, %s91_s19  }
   0x9   : > { %p1787_p5 = por %p102_p2, %p101_p0  ;;  %p1791_p6 = por %p108_p4, %p107_p3 }
   0xa   : > { %p1415_p7 = scmp.ge.s32.totalorder %s1714_s15, 1  ;;  %p140_p8 = scmp.lt.s32.totalorder %s1714_s15, 3 }
   0xc   : > { %p141_p9 = pnand %p1415_p7, %p140_p8 }
   0xd   : > { %p164_p10 = scmp.lt.s32.totalorder (!%p141_p9), %s1770_s16, 1  ;;  %v183_v0 = vlaneseq (!%p141_p9)  ;;  %v1716_v1 = vmov (!%p141_p9), 1983009808   ;;  %v1717_v3 = vmov (!%p141_p9), 0.0   ;;  %v1718_v5 = vmov (!%p141_p9), 0   ;;  %s1720_s29 = smov (!%p141_p9), 127  }
   0xe   : > { %144 = sbr.rel (%p141_p9) target bundleno = 469 (0x1d5), region = 32  ;;  %v181_v2 = vunpack.c.l.s4 (!%p141_p9), %v1716_v1  ;;  %1475 = vmatprep.subr.bf16.mxu1 (!%p141_p9), %v1717_v3  ;;  %241 = vmatprep.mubr.bf16.mxu0 (!%p141_p9), %v1718_v5  ;;  %vm1719_vm0 = vmmov (!%p141_p9), 0   ;;  %vm199_vm1 = vcmask (!%p141_p9), 1041408   ;;  %v177_v21 = vld [vmem:[%s1978_s1] sm:$0xf] (!%p141_p9)  ;;  %vm195_vm2 = vcmask (!%p141_p9), 31744  }
   0xf   : > { %v184_v4 = vshrl.u32 (!%p141_p9), %v183_v0, 7  ;;  %1649 = vset.pattern.permute.xlu0 (!%p141_p9), %v1718_v5  ;;  %1477 = vmatprep.mubr.msk.bf16.mxu1 (!%p141_p9), %vm1719_vm0, %v1717_v3  ;;  %s1721_s5 = smov (!%p141_p9), 126   ;;  %s1722_s6 = smov (!%p141_p9), 110   ;;  %v170_v22 = vld [vmem:[%s1979_s2] sm:$0xff] (!%p141_p9)  ;;  %vm322_vm3 = vcmask (!%p141_p9), 1039360   ;;  %vm451_vm4 = vcmask (!%p141_p9), 1031168  }
  0x10   : > { %v182_v6 = vunpack.c.0.s8 (!%p141_p9), %v181_v2  ;;  %s1723_s7 = smov (!%p141_p9), 109   ;;  %s1724_s8 = smov (!%p141_p9), 108   ;;  %v1421_v31 = vld [vmem:[%s1978_s1 + $0x4] sm:$0xf] (!%p141_p9)  ;;  %vm580_vm5 = vcmask (!%p141_p9), 900096   ;;  %vm709_vm6 = vcmask (!%p141_p9), 891904  }
  0x11   : > { %s1725_s9 = smov (!%p141_p9), 92   ;;  %s1726_s10 = smov (!%p141_p9), 91   ;;  %v1425_v44 = vld [vmem:[%s1978_s1 + $0x8] sm:$0xf] (!%p141_p9)  ;;  %v1429_v58 = vld [vmem:[%s1978_s1 + $0xc] sm:$0xf] (!%p141_p9) }
  0x12   : > { %v185_v7 = vsub.s32 (!%p141_p9), %v182_v6, %v184_v4  ;;  %s1727_s11 = smov (!%p141_p9), 90   ;;  %vm838_vm7 = vcmask (!%p141_p9), 883712   ;;  %vm967_vm8 = vcmask (!%p141_p9), 752640   ;;  %vm1096_vm9 = vcmask (!%p141_p9), 744448   ;;  %s161_s17 = sand.u32 (!%p141_p9), 1, %s1706_s13  }
  0x13   : > { %vm1225_vm10 = vcmask (!%p141_p9), 736256   ;;  %s1596_s19 = smul.u32 (!%p141_p9), 24, %s161_s17  ;;  %vm1336_vm14 = vcmask (!%p141_p9), 261120   ;;  %s1728_s30 = smov (!%p141_p9), [#allocation2]  }
  0x14   : > { %s1597_s20 = smul.u32 (!%p141_p9), 384, %s1770_s16  ;;  %s1656_s4 = sshll.u32 (!%p141_p9), %s1728_s30, 4  ;;  %s1657_s4 = int_to_ptr.vmem [resolvable:$false] %s1656_s4 }
  0x15   : > { %s165_s24 = scalar_select %p164_p10, %s1770_s16, 1 }
  0x16   : > { %s1933_s27 = scalar_lea.hbm %s1980_s3, %s1597_s20 }
  0x17   : > { %s1456_s25 = sshll.u32 %s165_s24, 3  ;;  %s163_s24 = scalar_lea.vmem [#allocation2], %s1596_s19 }
  0x18   : > { %s168_s28 = scalar_lea.vmem %s1977_s0, %s1456_s25  ;;  %s1353_s25 = sshll.u32 %s163_s24, 4  ;;  %s1935_s25 = int_to_ptr.vmem [resolvable:$true] %s1353_s25 }
  0x19   : > { %v293_v8 = vld [vmem:[%s168_s28] sm:$0xff]  ;;  %p1659_p0 = scmp.lt.s32.totalorder %s1935_s25, %s1657_s4 }
  0x1a   : > { %v176_v9 = vld [vmem:[%s168_s28] sm:$0x3f]  ;;  %v304_v10 = vrot.slane %v293_v8, %v185_v7  ;;  %v297_v11 = vcombine.high %v293_v8, %v293_v8  ;;  %v1433_v8 = vld [vmem:[%s1978_s1 + $0x10] sm:$0xf]  ;;  %s1339_s28 = scalar_lea.sflag [#allocation3], %s161_s17 }
  0x1b   : > { %v186_v12 = vrot.slane %v176_v9, %v185_v7  ;;  %v179_v13 = vcombine.high %v176_v9, %v176_v9 }
  0x1c   : > { %314 = vrot.lane.b32.xlu0 %v304_v10, %s1720_s29  ;;  %v312_v14 = vcombine.high %v304_v10, %v304_v10  ;;  %v311_v15 = vrot.slane %v297_v11, %v185_v7 }
  0x1d   : > { %v194_v16 = vcombine.high %v186_v12, %v186_v12  ;;  %v201_v17 = vsel %vm199_vm1, %v186_v12, 0  ;;  %v193_v18 = vrot.slane %v179_v13, %v185_v7 }
  0x1e   : > { %318 = vrot.lane.b32.xlu1 %v311_v15, %s1720_s29  ;;  %v313_v19 = vcombine.high %v311_v15, %v311_v15 }
  0x1f   : > { %1418 = vmatprep.subr.msk.bf16.mxu0 %vm199_vm1, %v194_v16  ;;  %v207_v20 = vsel %vm199_vm1, %v193_v18, 0 }
  0x20   : > { %210 = vmatpush1.bf16.msra.mxu0 %v201_v17  ;;  %316 = vrot.lane.b32.xlu0 %v312_v14, %s1720_s29 }
  0x21   : > { %1476 = vmatpush3.bf16.msra.mxu1 %v207_v20 }
  0x22   : > { %1481 = vmatprep.subr.bf16.mxu1 %v1717_v3  ;;  %320 = vrot.lane.b32.xlu1 %v313_v19, %s1720_s29  ;;  %s1652_s29 = scalar_lea.vmem %s1935_s25, 384 }
  0x23   : > { %1419 = vmatmul.mubr.msk.bf16.vlgmr.msra.gmra.mrb[0].mxu0 %vm195_vm2, %v177_v21  ;;  %p1653_p11 = scmp.ne.s32.totalorder %s1935_s25, %s1652_s29 }
  0x24   : > { %1478 = vmatmul.mubr.msk.bf16.vlgmr.msra.gmra.mrb[0].mxu1 %vm195_vm2, %v177_v21  ;;  %370 = vmatprep.mubr.bf16.mxu0 %v1718_v5 }
  0x25   : > { %443 = vrot.lane.b32.xlu0 %v304_v10, %s1721_s5  ;;  %1483 = vmatprep.mubr.msk.bf16.mxu1 %vm1719_vm0, %v1717_v3  ;;  %p1654_p12 = pnand %p1653_p11, %p1787_p5 }
  0x26   : > { %445 = vrot.lane.b32.xlu1 %v312_v14, %s1721_s5 }
  0x27   : > { %p1655_p13 = pneg %p1654_p12 }
  0x29   : > { %447 = vrot.lane.b32.xlu0 %v311_v15, %s1721_s5 }
  0x2a   : > { %449 = vrot.lane.b32.xlu1 %v313_v19, %s1721_s5  ;;  %s1658_s5 = scalar_lea.vmem %s1657_s4, 768 }
  0x2b   : > { %p1660_p1 = scmp.lt.s32.totalorder %s1658_s5, %s1652_s29 }
  0x2d   : > { %572 = vrot.lane.b32.xlu0 %v304_v10, %s1722_s6  ;;  %p1661_p2 = por %p1660_p1, %p1659_p0 }
  0x2e   : > { %574 = vrot.lane.b32.xlu1 %v312_v14, %s1722_s6 }
  0x2f   : > { %p1662_p3 = pnand %p1661_p2, %p1655_p13 }
  0x31   : > { %576 = vrot.lane.b32.xlu0 %v311_v15, %s1722_s6 }
  0x32   : > { %578 = vrot.lane.b32.xlu1 %v313_v19, %s1722_s6 }
  0x35   : > { %701 = vrot.lane.b32.xlu0 %v304_v10, %s1723_s7 }
  0x36   : > { %703 = vrot.lane.b32.xlu1 %v312_v14, %s1723_s7 }
  0x39   : > { %705 = vrot.lane.b32.xlu0 %v311_v15, %s1723_s7 }
  0x3a   : > { %707 = vrot.lane.b32.xlu1 %v313_v19, %s1723_s7 }
  0x3d   : > { %830 = vrot.lane.b32.xlu0 %v304_v10, %s1724_s8 }
  0x3e   : > { %832 = vrot.lane.b32.xlu1 %v312_v14, %s1724_s8 }
  0x41   : > { %834 = vrot.lane.b32.xlu0 %v311_v15, %s1724_s8 }
  0x42   : > { %836 = vrot.lane.b32.xlu1 %v313_v19, %s1724_s8 }
  0x45   : > { %959 = vrot.lane.b32.xlu0 %v304_v10, %s1725_s9 }
  0x46   : > { %961 = vrot.lane.b32.xlu1 %v312_v14, %s1725_s9 }
  0x49   : > { %963 = vrot.lane.b32.xlu0 %v311_v15, %s1725_s9 }
  0x4a   : > { %965 = vrot.lane.b32.xlu1 %v313_v19, %s1725_s9 }
  0x4d   : > { %1088 = vrot.lane.b32.xlu0 %v304_v10, %s1726_s10 }
  0x4e   : > { %1090 = vrot.lane.b32.xlu1 %v312_v14, %s1726_s10 }
  0x51   : > { %1092 = vrot.lane.b32.xlu0 %v311_v15, %s1726_s10 }
  0x52   : > { %1094 = vrot.lane.b32.xlu1 %v313_v19, %s1726_s10 }
  0x55   : > { %1217 = vrot.lane.b32.xlu0 %v304_v10, %s1727_s11 }
  0x56   : > { %1219 = vrot.lane.b32.xlu1 %v312_v14, %s1727_s11 }
  0x59   : > { %1221 = vrot.lane.b32.xlu0 %v311_v15, %s1727_s11 }
  0x5a   : > { %1223 = vrot.lane.b32.xlu1 %v313_v19, %s1727_s11  ;;  %v1437_v19 = vld [vmem:[%s1978_s1 + $0x14] sm:$0xf] }
  0x5d   : > { %173 = vperm.xlu0 %1649, %v170_v22  }
  0x8e   : > { %v315_v23 = vpop.permute.xlu0 %314 }
  0x90   : > { %v319_v24 = vpop.permute.xlu1 %318 }
  0x92   : > { %v317_v25 = vpop.permute.xlu0 %316 }
  0x93   : > { %v323_v26 = vsel %vm322_vm3, %v315_v23, %v317_v25  ;;  %v324_v27 = vsel %vm322_vm3, %v317_v25, %v319_v24 }
  0x94   : > { %v330_v28 = vsel %vm199_vm1, %v323_v26, 0  ;;  %v321_v29 = vpop.permute.xlu1 %320  ;;  %1422 = vmatprep.subr.msk.bf16.mxu0 %vm199_vm1, %v324_v27 }
  0x95   : > { %v325_v30 = vsel %vm322_vm3, %v319_v24, %v321_v29  ;;  %339 = vmatpush1.bf16.msra.mxu0 %v330_v28  ;;  %v1441_v29 = vld [vmem:[%s1978_s1 + $0x18] sm:$0xf] }
  0x96   : > { %v336_v32 = vsel %vm199_vm1, %v325_v30, 0 }
  0x97   : > { %v444_v33 = vpop.permute.xlu0 %443  ;;  %1482 = vmatpush3.bf16.msra.mxu1 %v336_v32 }
  0x98   : > { %1423 = vmatmul.mubr.msk.bf16.vlgmr.msra.gmra.mrb[0].mxu0 %vm195_vm2, %v1421_v31  ;;  %v446_v34 = vpop.permute.xlu1 %445  ;;  %1487 = vmatprep.subr.bf16.mxu1 %v1717_v3 }
  0x99   : > { %v452_v35 = vsel %vm451_vm4, %v444_v33, %v446_v34  ;;  %499 = vmatprep.mubr.bf16.mxu0 %v1718_v5 }
  0x9a   : > { %1484 = vmatmul.mubr.msk.bf16.vlgmr.msra.gmra.mrb[0].mxu1 %vm195_vm2, %v1421_v31  ;;  %v459_v37 = vsel %vm199_vm1, %v452_v35, 0 }
  0x9b   : > { %v448_v36 = vpop.permute.xlu0 %447  ;;  %1489 = vmatprep.mubr.msk.bf16.mxu1 %vm1719_vm0, %v1717_v3 }
  0x9c   : > { %v453_v38 = vsel %vm451_vm4, %v446_v34, %v448_v36  ;;  %v450_v39 = vpop.permute.xlu1 %449 }
  0x9d   : > { %1426 = vmatprep.subr.msk.bf16.mxu0 %vm199_vm1, %v453_v38  ;;  %v454_v40 = vsel %vm451_vm4, %v448_v36, %v450_v39  ;;  %v1445_v36 = vld [vmem:[%s1978_s1 + $0x1c] sm:$0xf] }
  0x9e   : > { %468 = vmatpush1.bf16.msra.mxu0 %v459_v37  ;;  %v465_v41 = vsel %vm199_vm1, %v454_v40, 0  ;;  %v1449_v40 = vld [vmem:[%s1978_s1 + $0x20] sm:$0xf] }
  0x9f   : > { %v573_v42 = vpop.permute.xlu0 %572  ;;  %1488 = vmatpush3.bf16.msra.mxu1 %v465_v41 }
  0xa0   : > { %v575_v43 = vpop.permute.xlu1 %574  ;;  %1493 = vmatprep.subr.bf16.mxu1 %v1717_v3 }
  0xa1   : > { %v581_v45 = vsel %vm580_vm5, %v573_v42, %v575_v43 }
  0xa2   : > { %v588_v47 = vsel %vm199_vm1, %v581_v45, 0 }
  0xa3   : > { %v577_v46 = vpop.permute.xlu0 %576 }
  0xa4   : > { %v582_v48 = vsel %vm580_vm5, %v575_v43, %v577_v46  ;;  %1427 = vmatmul.mubr.msk.bf16.vlgmr.msra.gmra.mrb[0].mxu0 %vm195_vm2, %v1425_v44  ;;  %v579_v49 = vpop.permute.xlu1 %578 }
  0xa5   : > { %1430 = vmatprep.subr.msk.bf16.mxu0 %vm199_vm1, %v582_v48  ;;  %v583_v50 = vsel %vm580_vm5, %v577_v46, %v579_v49  ;;  %628 = vmatprep.mubr.bf16.mxu0 %v1718_v5 }
  0xa6   : > { %597 = vmatpush1.bf16.msra.mxu0 %v588_v47  ;;  %1490 = vmatmul.mubr.msk.bf16.vlgmr.msra.gmra.mrb[0].mxu1 %vm195_vm2, %v1425_v44  ;;  %v594_v51 = vsel %vm199_vm1, %v583_v50, 0 }
  0xa7   : > { %v702_v52 = vpop.permute.xlu0 %701  ;;  %1494 = vmatpush3.bf16.msra.mxu1 %v594_v51  ;;  %1495 = vmatprep.mubr.msk.bf16.mxu1 %vm1719_vm0, %v1717_v3 }
  0xa8   : > { %v704_v53 = vpop.permute.xlu1 %703  ;;  %1499 = vmatprep.subr.bf16.mxu1 %v1717_v3 }
  0xa9   : > { %v710_v55 = vsel %vm709_vm6, %v702_v52, %v704_v53 }
  0xaa   : > { %v717_v60 = vsel %vm199_vm1, %v710_v55, 0 }
  0xab   : > { %v706_v54 = vpop.permute.xlu0 %705 }
  0xac   : > { %v711_v56 = vsel %vm709_vm6, %v704_v53, %v706_v54  ;;  %v708_v57 = vpop.permute.xlu1 %707 }
  0xad   : > { %1434 = vmatprep.subr.msk.bf16.mxu0 %vm199_vm1, %v711_v56  ;;  %v712_v59 = vsel %vm709_vm6, %v706_v54, %v708_v57 }
  0xae   : > { %v723_v62 = vsel %vm199_vm1, %v712_v59, 0 }
  0xaf   : > { %v831_v61 = vpop.permute.xlu0 %830 }
  0xb0   : > { %1431 = vmatmul.mubr.msk.bf16.vlgmr.msra.gmra.mrb[0].mxu0 %vm195_vm2, %v1429_v58  ;;  %v833_v63 = vpop.permute.xlu1 %832 }
  0xb1   : > { %726 = vmatpush1.bf16.msra.mxu0 %v717_v60  ;;  %757 = vmatprep.mubr.bf16.mxu0 %v1718_v5  ;;  %v839_v6 = vsel %vm838_vm7, %v831_v61, %v833_v63 }
  0xb2   : > { %1496 = vmatmul.mubr.msk.bf16.vlgmr.msra.gmra.mrb[0].mxu1 %vm195_vm2, %v1429_v58  ;;  %v846_v10 = vsel %vm199_vm1, %v839_v6, 0 }
  0xb3   : > { %v835_v0 = vpop.permute.xlu0 %834  ;;  %1500 = vmatpush3.bf16.msra.mxu1 %v723_v62  ;;  %1501 = vmatprep.mubr.msk.bf16.mxu1 %vm1719_vm0, %v1717_v3 }
  0xb4   : > { %v840_v1 = vsel %vm838_vm7, %v833_v63, %v835_v0  ;;  %v837_v2 = vpop.permute.xlu1 %836  ;;  %1505 = vmatprep.subr.bf16.mxu1 %v1717_v3 }
  0xb5   : > { %1438 = vmatprep.subr.msk.bf16.mxu0 %vm199_vm1, %v840_v1  ;;  %v841_v9 = vsel %vm838_vm7, %v835_v0, %v837_v2 }
  0xb6   : > { %v852_v13 = vsel %vm199_vm1, %v841_v9, 0 }
  0xb7   : > { %v960_v4 = vpop.permute.xlu0 %959 }
  0xb8   : > { %v962_v7 = vpop.permute.xlu1 %961 }
  0xb9   : > { %v968_v16 = vsel %vm967_vm8, %v960_v4, %v962_v7 }
  0xba   : > { %v975_v21 = vsel %vm199_vm1, %v968_v16, 0 }
  0xbb   : > { %v964_v11 = vpop.permute.xlu0 %963 }
  0xbc   : > { %v969_v12 = vsel %vm967_vm8, %v962_v7, %v964_v11  ;;  %1435 = vmatmul.mubr.msk.bf16.vlgmr.msra.gmra.mrb[0].mxu0 %vm195_vm2, %v1433_v8  ;;  %v966_v15 = vpop.permute.xlu1 %965 }
  0xbd   : > { %855 = vmatpush1.bf16.msra.mxu0 %v846_v10  ;;  %886 = vmatprep.mubr.bf16.mxu0 %v1718_v5  ;;  %v970_v20 = vsel %vm967_vm8, %v964_v11, %v966_v15 }
  0xbe   : > { %1502 = vmatmul.mubr.msk.bf16.vlgmr.msra.gmra.mrb[0].mxu1 %vm195_vm2, %v1433_v8  ;;  %1442 = vmatprep.subr.msk.bf16.mxu0 %vm199_vm1, %v969_v12  ;;  %v981_v23 = vsel %vm199_vm1, %v970_v20, 0 }
  0xbf   : > { %v1089_v14 = vpop.permute.xlu0 %1088  ;;  %1506 = vmatpush3.bf16.msra.mxu1 %v852_v13  ;;  %1507 = vmatprep.mubr.msk.bf16.mxu1 %vm1719_vm0, %v1717_v3 }
  0xc0   : > { %1511 = vmatprep.subr.bf16.mxu1 %v1717_v3  ;;  %v1091_v18 = vpop.permute.xlu1 %1090 }
  0xc1   : > { %v1097_v26 = vsel %vm1096_vm9, %v1089_v14, %v1091_v18 }
  0xc2   : > { %v1104_v31 = vsel %vm199_vm1, %v1097_v26, 0 }
  0xc3   : > { %v1093_v17 = vpop.permute.xlu0 %1092 }
  0xc4   : > { %v1098_v22 = vsel %vm1096_vm9, %v1091_v18, %v1093_v17  ;;  %v1095_v25 = vpop.permute.xlu1 %1094 }
  0xc5   : > { %v1099_v30 = vsel %vm1096_vm9, %v1093_v17, %v1095_v25 }
  0xc6   : > { %v1110_v33 = vsel %vm199_vm1, %v1099_v30, 0 }
  0xc7   : > { %v1218_v24 = vpop.permute.xlu0 %1217 }
  0xc8   : > { %1439 = vmatmul.mubr.msk.bf16.vlgmr.msra.gmra.mrb[0].mxu0 %vm195_vm2, %v1437_v19  ;;  %v1220_v28 = vpop.permute.xlu1 %1219 }
  0xc9   : > { %984 = vmatpush1.bf16.msra.mxu0 %v975_v21  ;;  %1015 = vmatprep.mubr.bf16.mxu0 %v1718_v5  ;;  %v1226_v35 = vsel %vm1225_vm10, %v1218_v24, %v1220_v28 }
  0xca   : > { %1508 = vmatmul.mubr.msk.bf16.vlgmr.msra.gmra.mrb[0].mxu1 %vm195_vm2, %v1437_v19  ;;  %1446 = vmatprep.subr.msk.bf16.mxu0 %vm199_vm1, %v1098_v22  ;;  %v1233_v38 = vsel %vm199_vm1, %v1226_v35, 0 }
  0xcb   : > { %1512 = vmatpush3.bf16.msra.mxu1 %v981_v23  ;;  %1513 = vmatprep.mubr.msk.bf16.mxu1 %vm1719_vm0, %v1717_v3  ;;  %v1222_v27 = vpop.permute.xlu0 %1221 }
  0xcc   : > { %1517 = vmatprep.subr.bf16.mxu1 %v1717_v3  ;;  %v1227_v32 = vsel %vm1225_vm10, %v1220_v28, %v1222_v27  ;;  %v1224_v34 = vpop.permute.xlu1 %1223 }
  0xcd   : > { %v1228_v37 = vsel %vm1225_vm10, %v1222_v27, %v1224_v34 }
  0xce   : > { %v1239_v39 = vsel %vm199_vm1, %v1228_v37, 0 }
  0xd4   : > { %1443 = vmatmul.mubr.msk.bf16.vlgmr.msra.gmra.mrb[0].mxu0 %vm195_vm2, %v1441_v29 }
  0xd5   : > { %1113 = vmatpush1.bf16.msra.mxu0 %v1104_v31  ;;  %1144 = vmatprep.mubr.bf16.mxu0 %v1718_v5 }
  0xd6   : > { %1514 = vmatmul.mubr.msk.bf16.vlgmr.msra.gmra.mrb[0].mxu1 %vm195_vm2, %v1441_v29  ;;  %1450 = vmatprep.subr.msk.bf16.mxu0 %vm199_vm1, %v1227_v32 }
  0xd7   : > { %1518 = vmatpush3.bf16.msra.mxu1 %v1110_v33  ;;  %1519 = vmatprep.mubr.msk.bf16.mxu1 %vm1719_vm0, %v1717_v3 }
  0xd8   : > { %1523 = vmatprep.subr.bf16.mxu1 %v1717_v3 }
  0xdc   : > { %v174_v41 = vpop.permute.xlu0 %173 }
  0xe0   : > { %1447 = vmatmul.mubr.msk.bf16.vlgmr.msra.gmra.mrb[0].mxu0 %vm195_vm2, %v1445_v36 }
  0xe1   : > { %1242 = vmatpush1.bf16.msra.mxu0 %v1233_v38  ;;  %1273 = vmatprep.mubr.bf16.mxu0 %v1718_v5 }
  0xe2   : > { %1520 = vmatmul.mubr.msk.bf16.vlgmr.msra.gmra.mrb[0].mxu1 %vm195_vm2, %v1445_v36 }
  0xe3   : > { %1524 = vmatpush3.bf16.msra.mxu1 %v1239_v39  ;;  %1525 = vmatprep.mubr.msk.bf16.mxu1 %vm1719_vm0, %v1717_v3 }
  0xec   : > { %1451 = vmatmul.mubr.msk.bf16.vlgmr.msra.gmra.mrb[0].mxu0 %vm195_vm2, %v1449_v40 }
  0xee   : > { %1526 = vmatmul.mubr.msk.bf16.vlgmr.msra.gmra.mrb[0].mxu1 %vm195_vm2, %v1449_v40 }
 0x1bf   : > { %v1275_v5 = vpop.f32.mrb[0].mxu0 }
 0x1c0   : > { %v1529_v42 = vadd.f32 %v1275_v5, %v174_v41  ;;  %v1277_v43 = vpop.f32.mrb[1].mxu0 }
 0x1c1   : > { %v1530_v44 = vadd.f32 %v1277_v43, %v174_v41  ;;  %v1279_v45 = vpop.f32.mrb[2].mxu0  ;;  %v1316_v46 = vpop.f32.mrb[0].mxu1 }
 0x1c2   : > { %vm1325_vm11 = vcmp.ge.f32.partialorder %v1529_v42, 0.0  ;;  %v1328_v3 = vmul.f32 0.01, %v1529_v42  ;;  %v1531_v47 = vadd.f32 %v1316_v46, %v174_v41  ;;  %v1280_v48 = vpop.f32.mrb[3].mxu0  ;;  %v1527_v49 = vpop.f32.mrb[1].mxu1 }
 0x1c3   : > { %vm1326_vm12 = vcmp.ge.f32.partialorder %v1530_v44, 0.0  ;;  %v1329_v50 = vmul.f32 0.01, %v1530_v44  ;;  %v1319_v51 = vpop.f32.mrb[2].mxu1 }
 0x1c4   : > { %v1331_v52 = vsel %vm1325_vm11, %v1529_v42, %v1328_v3  ;;  %vm1327_vm13 = vcmp.ge.f32.partialorder %v1531_v47, 0.0  ;;  %v1330_v53 = vmul.f32 0.01, %v1531_v47  ;;  %v1528_v54 = vpop.f32.mrb[3].mxu1 }
 0x1c5   : > { %1334 = vst [vmem:[%s163_s24] sm:$0xff] %v1331_v52  ;;  %v1332_v55 = vsel %vm1326_vm12, %v1530_v44, %v1329_v50 }
 0x1c6   : > { %1335 = vst [vmem:[%s163_s24 + $0x8] sm:$0xff] %v1332_v55  ;;  %v1333_v56 = vsel %vm1327_vm13, %v1531_v47, %v1330_v53 }
 0x1c7   : > { %1337 = vst.msk [vmem:[%s163_s24 + $0x10] sm:$0xff] %vm1336_vm14, %v1333_v56 }
 0x1c8   : > { %1665 = shalt.err (!%p1662_p3)
}
 0x1c9   : > { %s1666_s6 = scalar_lea.hbm %s1933_s27, 384  ;;  %s1670_s9 = scalar_lea.hbm %s1980_s3, 768 }
 0x1ca   : > { %p1667_p4 = scmp.ne.s32.totalorder %s1933_s27, %s1666_s6  ;;  %p1671_p9 = scmp.lt.u32.totalorder %s1933_s27, %s1980_s3 }
 0x1cb   : > { %p1672_p10 = scmp.lt.u32.totalorder %s1670_s9, %s1666_s6  ;;  %p1674_p12 = scmp.lt.u32.totalorder %s1666_s6, %s1933_s27 }
 0x1cc   : > { %p1668_p7 = pnand %p1667_p4, %p1787_p5 }
 0x1cd   : > { %p1673_p11 = por %p1672_p10, %p1671_p9 }
 0x1ce   : > { %p1669_p8 = pneg %p1668_p7 }
 0x1cf   : > { %p1675_p13 = por %p1674_p12, %p1673_p11 }
 0x1d1   : > { %p1676_p0 = pnand %p1675_p13, %p1669_p8 }
 0x1d3   : > { %1679 = shalt.err (!%p1676_p0)
}
 0x1d4   : > { %1598 = dma.vmem_to_hbm [thread:$0]  (%p1787_p5), %s1935_s25, 384, %s1933_s27, %s1339_s28  }
 0x1d5 PF: > { %p1604_p1 = scmp.ge.s32.totalorder %s1714_s15, 2  ;;  %s1365_s17 = sand.u32 1, %s1702_s12  }
 0x1d6   : > { %s1366_s19 = scalar_lea.sflag [#allocation3], %s1365_s17 }
 0x1d7   : > { %p1601_p2 = pnand %p1604_p1, %p1791_p6 }
 0x1d9   : > { %1697 = dma.done.wait (!%p1601_p2), %s1366_s19, 384  }
 0x1da   : > { %1699 = vsyncadd (!%p1601_p2), %s1366_s19, 4294966912  ;;  %p13_p3 = scmp.ge.s32.totalorder %s1774_s18, 4   ;;  %s1983_s12 = smov %s1706_s13 }
 0x1db   : > { %s1984_s13 = smov %s1710_s14  ;;  %s1985_s14 = smov %s1785_s21 }
 0x1dc   : > { %s1986_s15 = smov %s1774_s18  ;;  %15 = sbr.rel (!%p13_p3) target bundleno = 3 (0x3), region = 75 }
 0x1e3   :  { %1371 = vsyncpa [#allocation3], 1 }
 0x1e4   :  { %1373 = vsyncpa [#allocation3 + $0x1], 1 }

</bundles_post_ra>
